<compile_context>
chip_gen: v6e
topology: v6e:2x2x1
jax: 0.10.0
libtpu: 0.0.40
codegen_flags: <defaults>
</compile_context>

<pallas_src>
from functools import partial

import numpy as np
import jax
import jax.numpy as jnp
from jax.experimental import pallas as pl
from jax.experimental.pallas import tpu as pltpu


# -----------------------------------------------------------------------------
# Pallas kernel: fused FFNN(head)+FFNN(tail) + biaffine classifier, single block
# -----------------------------------------------------------------------------
def re_decoder_kernel(x_ref, w1_ref, b1_ref, w2_ref, b2_ref,
                      u2_ref, wc_ref, bl_ref, out_ref):
    bf16 = jnp.bfloat16
    f32 = jnp.float32

    x = x_ref[...]                                           # (rows, 4D) bf16

    # layer 1 (block-diag): [h1 | t1] = relu(x @ diag(wh1, wt1) + [bh1|bt1])
    l1 = jnp.maximum(
        jnp.dot(x, w1_ref[...], preferred_element_type=f32) + b1_ref[...], 0.0)

    # layer 2 (block-diag): act = [heads | tails]
    act = jnp.maximum(
        jnp.dot(l1.astype(bf16), w2_ref[...], preferred_element_type=f32)
        + b2_ref[...], 0.0)                                  # (rows, 2*H2)

    h2 = act.shape[-1] // 2
    heads = act[:, :h2]                                      # (rows, H2)
    tails = act[:, h2:]                                      # (rows, H2)

    # Bilinear term:
    #   bil[r, o] = sum_ij heads[r,i] * U[o,i,j] * tails[r,j]
    # U is pre-reshaped host-side to U2[i, o*H2+j] = U[o,i,j]; one MXU push gives
    # hu_all[r, o*H2+j] = sum_i heads[r,i] U[o,i,j].
    hu_all = jnp.dot(heads.astype(bf16), u2_ref[...],
                     preferred_element_type=f32)             # (rows, O*H2)
    num_out = (wc_ref.shape[0] - act.shape[-1]) // h2
    prod = hu_all * jnp.tile(tails, (1, num_out))            # (rows, O*H2)

    # Fused classifier: one matmul does both the per-class reduce over j
    # (one-hot "segment-sum" block of wc) and the linear(cat(heads, tails))
    # term (classifier-weight block of wc).  Output padded to 128 lanes for a
    # lane-dense, unmasked store; bias is already lane-padded.
    feat = jnp.concatenate([prod, act], axis=-1)             # (rows, O*H2+2*H2)
    out = (jnp.dot(feat.astype(bf16), wc_ref[...], preferred_element_type=f32)
           + bl_ref[...])                                    # (rows, 128)

    out_ref[...] = out.astype(out_ref.dtype)


# -----------------------------------------------------------------------------
# Parameter packing (done once): block-diagonal FFNN weights, reshaped bilinear
# weight, fused lane-padded classifier weight.
# -----------------------------------------------------------------------------
def pack_re_decoder_params(params, out_pad=128, mxu_dtype=jnp.bfloat16):
    D2, H = params["wh1"].shape        # (2*D, H)
    H2 = params["wh2"].shape[1]
    O = params["bl"].shape[1]
    assert out_pad >= O

    zD = jnp.zeros((D2, H), jnp.float32)
    zH = jnp.zeros((H, H2), jnp.float32)

    w1 = jnp.concatenate(
        [jnp.concatenate([params["wh1"], zD], axis=1),
         jnp.concatenate([zD, params["wt1"]], axis=1)], axis=0)       # (4D, 2H)
    b1 = jnp.concatenate([params["bh1"], params["bt1"]], axis=1)       # (1, 2H)
    w2 = jnp.concatenate(
        [jnp.concatenate([params["wh2"], zH], axis=1),
         jnp.concatenate([zH, params["wt2"]], axis=1)], axis=0)       # (2H, 2H2)
    b2 = jnp.concatenate([params["bh2"], params["bt2"]], axis=1)       # (1, 2H2)

    # U[o, i, j] -> U2[i, o*H2 + j]
    u2 = jnp.transpose(params["u"], (1, 0, 2)).reshape(H2, O * H2)     # (H2, O*H2)

    # one-hot "segment sum" matrix (bilinear reduce over j), padded to out_pad
    sel = np.zeros((O * H2, out_pad), np.float32)
    for o in range(O):
        sel[o * H2:(o + 1) * H2, o] = 1.0

    # NOTE: when importing torch weights, Linear(2*H2, O).weight is (O, 2*H2);
    # wl_head/wl_tail must be weight[:, :H2].T and weight[:, H2:].T respectively.
    wl = jnp.concatenate([params["wl_head"], params["wl_tail"]], axis=0)  # (2H2, O)
    wl = jnp.pad(wl, ((0, 0), (0, out_pad - O)))

    # fused classifier matrix:  [prod | act] @ wc  ==  prod @ sel + act @ wl
    wc = jnp.concatenate([jnp.asarray(sel), wl], axis=0)               # (O*H2+2H2, 128)
    bl = jnp.pad(params["bl"], ((0, 0), (0, out_pad - O)))

    return {
        "emb": params["emb"].astype(jnp.float32),
        "w1": w1.astype(mxu_dtype), "b1": b1.astype(jnp.float32),
        "w2": w2.astype(mxu_dtype), "b2": b2.astype(jnp.float32),
        "u2": u2.astype(mxu_dtype),
        "wc": wc.astype(mxu_dtype),
        "bl": bl.astype(jnp.float32),
    }


# -----------------------------------------------------------------------------
# Forward: device-side gather/concat + single-block Pallas call
# -----------------------------------------------------------------------------
@partial(jax.jit, static_argnames=("num_out",))
def re_decoder_forward(hidden_states, packed, head_word_idx, head_lab,
                       tail_word_idx, tail_lab, *, num_out):
    B, N, D = hidden_states.shape
    R = head_word_idx.shape[1]
    rows = B * R

    # Device-side gather + concat (replaces the per-batch torch loop)
    head_hid = jnp.take_along_axis(hidden_states, head_word_idx[..., None], axis=1)
    tail_hid = jnp.take_along_axis(hidden_states, tail_word_idx[..., None], axis=1)
    head_emb = jnp.take(packed["emb"], head_lab, axis=0)
    tail_emb = jnp.take(packed["emb"], tail_lab, axis=0)
    x = jnp.concatenate([head_hid, head_emb, tail_hid, tail_emb], axis=-1)
    x = x.reshape(rows, 4 * D).astype(packed["w1"].dtype)    # (rows, 4D) bf16

    out_pad = packed["bl"].shape[1]
    ins = (x, packed["w1"], packed["b1"], packed["w2"], packed["b2"],
           packed["u2"], packed["wc"], packed["bl"])

    flops = 2 * rows * (
        x.shape[1] * packed["w1"].shape[1]                    # layer 1
        + packed["w1"].shape[1] * packed["w2"].shape[1]       # layer 2
        + (packed["w2"].shape[1] // 2) * packed["u2"].shape[1]  # heads @ U2
        + packed["wc"].shape[0] * out_pad)                    # fused classifier
    bytes_accessed = (sum(int(np.prod(a.shape)) * a.dtype.itemsize for a in ins)
                      + rows * out_pad * 4)

    vmem = pl.BlockSpec(memory_space=pltpu.MemorySpace.VMEM)
    # TODO(synk): if rows grows large (>> 256), switch to a row-chunked grid
    # (grid over rows, weights as grid-invariant blocks, "parallel" semantics).
    logits_pad = pl.pallas_call(
        re_decoder_kernel,
        out_shape=jax.ShapeDtypeStruct((rows, out_pad), jnp.float32),
        in_specs=[vmem] * len(ins),
        out_specs=vmem,
        cost_estimate=pl.CostEstimate(flops=flops, transcendentals=0,
                                      bytes_accessed=bytes_accessed),
    )(*ins)

    return logits_pad[:, :num_out].reshape(B, R, num_out)


# -----------------------------------------------------------------------------
# Pure-JAX reference (mirrors the kernel's bf16 matmul casts, f32 accumulation)
# -----------------------------------------------------------------------------
def reference_logits(hidden_states, params, head_word_idx, head_lab,
                     tail_word_idx, tail_lab):
    bf, f32 = jnp.bfloat16, jnp.float32
    mm = lambda a, w: jnp.dot(a.astype(bf), w.astype(bf), preferred_element_type=f32)

    emb = params["emb"]
    head_hid = jnp.take_along_axis(hidden_states, head_word_idx[..., None], axis=1)
    tail_hid = jnp.take_along_axis(hidden_states, tail_word_idx[..., None], axis=1)
    head_repr = jnp.concatenate([head_hid, jnp.take(emb, head_lab, axis=0)], -1)
    tail_repr = jnp.concatenate([tail_hid, jnp.take(emb, tail_lab, axis=0)], -1)

    h1 = jax.nn.relu(mm(head_repr, params["wh1"]) + params["bh1"])
    heads = jax.nn.relu(mm(h1, params["wh2"]) + params["bh2"])
    t1 = jax.nn.relu(mm(tail_repr, params["wt1"]) + params["bt1"])
    tails = jax.nn.relu(mm(t1, params["wt2"]) + params["bt2"])

    hu = jnp.einsum('bri,oij->broj', heads.astype(bf), params["u"].astype(bf),
                    preferred_element_type=f32)
    prod = (hu * tails[:, :, None, :]).astype(bf).astype(f32)
    bil = jnp.sum(prod, axis=-1)                                       # (B,R,O)
    lin = mm(heads, params["wl_head"]) + mm(tails, params["wl_tail"]) + params["bl"]
    return bil + lin


# -----------------------------------------------------------------------------
# Host-side glue (same semantics as the PyTorch module's Python code)
# -----------------------------------------------------------------------------
def build_relation(relations, entities):
    batch_size = len(relations)
    new_relations = []
    for b in range(batch_size):
        if len(entities[b]["start"]) <= 2:
            entities[b] = {"end": [1, 1], "label": [0, 0], "start": [0, 0]}
        all_possible = set(
            (i, j)
            for i in range(len(entities[b]["label"]))
            for j in range(len(entities[b]["label"]))
            if entities[b]["label"][i] == 1 and entities[b]["label"][j] == 2)
        if len(all_possible) == 0:
            all_possible = {(0, 1)}
        positive = set(zip(relations[b]["head"], relations[b]["tail"]))
        negative = all_possible - positive
        positive = set(i for i in positive if i in all_possible)
        reordered = list(positive) + list(negative)
        doc = {"head": [i[0] for i in reordered],
               "tail": [i[1] for i in reordered],
               "label": [1] * len(positive) + [0] * (len(reordered) - len(positive))}
        assert len(doc["head"]) != 0
        new_relations.append(doc)
    return new_relations, entities


def get_predicted_relations(logits_np, relations, entities):
    pred = []
    for i, pred_label in enumerate(logits_np.argmax(-1)):
        if pred_label != 1:
            continue
        rel = {}
        rel["head_id"] = relations["head"][i]
        rel["head"] = (entities["start"][rel["head_id"]], entities["end"][rel["head_id"]])
        rel["head_type"] = entities["label"][rel["head_id"]]
        rel["tail_id"] = relations["tail"][i]
        rel["tail"] = (entities["start"][rel["tail_id"]], entities["end"][rel["tail_id"]])
        rel["tail_type"] = entities["label"][rel["tail_id"]]
        rel["type"] = 1
        pred.append(rel)
    return pred


def cross_entropy_loss(logits, labels, mask):
    # mean CE over valid (un-padded) relation rows, matching nn.CrossEntropyLoss
    logp = jax.nn.log_softmax(logits, axis=-1)
    nll = -jnp.take_along_axis(logp, labels[:, None], axis=-1)[:, 0]
    return jnp.sum(nll * mask) / jnp.sum(mask)


# -----------------------------------------------------------------------------
# Main
# -----------------------------------------------------------------------------
if __name__ == "__main__":
    # Small config consistent with the module
    B = 2            # batch
    N = 16           # max_n_words
    D = 32           # input_size == context_dim
    H = 32           # config.hidden_size
    H2 = H // 2      # 16
    O = 2            # biaffine out_features
    R_PAD = 16       # padded number of relations per doc  (B*R_PAD = 32 rows)

    key = jax.random.PRNGKey(0)
    keys = jax.random.split(key, 16)

    hidden_states = jax.random.normal(keys[0], (B, N, D), dtype=jnp.float32)

    # Deterministic parameter init (synthetic; shapes from the module __init__)
    s = 0.1
    params = {
        "emb": jax.random.normal(keys[1], (3, D), jnp.float32) * s,      # entity_emb
        "wh1": jax.random.normal(keys[2], (2 * D, H), jnp.float32) * s,
        "bh1": jax.random.normal(keys[3], (1, H), jnp.float32) * s,
        "wh2": jax.random.normal(keys[4], (H, H2), jnp.float32) * s,
        "bh2": jax.random.normal(keys[5], (1, H2), jnp.float32) * s,
        "wt1": jax.random.normal(keys[6], (2 * D, H), jnp.float32) * s,
        "bt1": jax.random.normal(keys[7], (1, H), jnp.float32) * s,
        "wt2": jax.random.normal(keys[8], (H, H2), jnp.float32) * s,
        "bt2": jax.random.normal(keys[9], (1, H2), jnp.float32) * s,
        "u":  jax.random.normal(keys[10], (O, H2, H2), jnp.float32) * s,  # Bilinear weight
        "wl_head": jax.random.normal(keys[11], (H2, O), jnp.float32) * s, # Linear(2*H2,O) split
        "wl_tail": jax.random.normal(keys[12], (H2, O), jnp.float32) * s,
        "bl": jax.random.normal(keys[13], (1, O), jnp.float32) * s,
    }
    # TODO(synk): dropout and scale_grad_by_freq on the embedding are training-time
    # behaviors; the eval forward implemented here treats dropout as identity.

    # Synthetic entities / gold relations (host-side dicts, as in the module)
    entities = [
        {"start": [0, 2, 4, 6, 8, 10], "end": [1, 3, 5, 7, 9, 11],
         "label": [1, 1, 1, 2, 2, 2]},
        {"start": [1, 3, 5, 7, 9, 11], "end": [2, 4, 6, 8, 10, 12],
         "label": [1, 1, 1, 2, 2, 2]},
    ]
    relations = [
        {"head": [0, 1], "tail": [3, 4]},
        {"head": [2], "tail": [5]},
    ]

    relations, entities = build_relation(relations, entities)

    # Host side only builds tiny padded int32 index/label tables; the float
    # gather/concat happens on device inside re_decoder_forward.
    head_word_idx = np.zeros((B, R_PAD), np.int32)
    head_lab = np.zeros((B, R_PAD), np.int32)
    tail_word_idx = np.zeros((B, R_PAD), np.int32)
    tail_lab = np.zeros((B, R_PAD), np.int32)
    labels = np.zeros((B, R_PAD), np.int32)
    mask = np.zeros((B, R_PAD), np.float32)
    n_rel = []
    for b in range(B):
        he = np.array(relations[b]["head"], np.int32)
        te = np.array(relations[b]["tail"], np.int32)
        st = np.array(entities[b]["start"], np.int32)
        lb = np.array(entities[b]["label"], np.int32)
        r = len(he)
        assert r <= R_PAD
        n_rel.append(r)
        head_word_idx[b, :r] = st[he]; head_lab[b, :r] = lb[he]
        tail_word_idx[b, :r] = st[te]; tail_lab[b, :r] = lb[te]
        labels[b, :r] = np.array(relations[b]["label"], np.int32)
        mask[b, :r] = 1.0

    packed = pack_re_decoder_params(params)

    # ---- Pallas hot path: fused gather-fed FFNNs + biaffine classifier ----
    logits = re_decoder_forward(
        hidden_states, packed,
        jnp.asarray(head_word_idx), jnp.asarray(head_lab),
        jnp.asarray(tail_word_idx), jnp.asarray(tail_lab),
        num_out=O)
    logits = jax.block_until_ready(logits)

    # Sanity check against a pure-JAX reference of the original (unfused) math
    ref = reference_logits(hidden_states, params,
                           jnp.asarray(head_word_idx), jnp.asarray(head_lab),
                           jnp.asarray(tail_word_idx), jnp.asarray(tail_lab))
    np.testing.assert_allclose(np.asarray(logits), np.asarray(ref),
                               rtol=3e-2, atol=3e-2)

    # CE loss over the concatenation of all (valid) relations, mean reduction
    loss = cross_entropy_loss(
        logits.reshape(B * R_PAD, O),
        jnp.asarray(labels).reshape(B * R_PAD),
        jnp.asarray(mask).reshape(B * R_PAD))
    loss = jax.block_until_ready(loss)

    # Host-side predicted-relation dicts (glue, like the PyTorch code); padded
    # rows are sliced off before argmax so they never emit spurious predictions.
    logits_np = np.asarray(logits)
    all_pred_relations = [
        get_predicted_relations(logits_np[b, :n_rel[b]], relations[b], entities[b])
        for b in range(B)
    ]

    assert np.isfinite(float(loss))
    assert logits_np.shape == (B, R_PAD, O)
    print("KERNEL_OK")
</pallas_src>

<mosaic_0001>
module attributes {stable_mosaic.version = 11 : i64} {
  func.func @re_decoder_kernel(%arg0: memref<32x128xbf16, #tpu.memory_space<vmem>>, %arg1: memref<128x64xbf16, #tpu.memory_space<vmem>>, %arg2: memref<1x64xf32, #tpu.memory_space<vmem>>, %arg3: memref<64x32xbf16, #tpu.memory_space<vmem>>, %arg4: memref<1x32xf32, #tpu.memory_space<vmem>>, %arg5: memref<16x32xbf16, #tpu.memory_space<vmem>>, %arg6: memref<64x128xbf16, #tpu.memory_space<vmem>>, %arg7: memref<1x128xf32, #tpu.memory_space<vmem>>, %arg8: memref<32x128xf32, #tpu.memory_space<vmem>>) attributes {dimension_semantics = [], scalar_prefetch = 0 : i64, scratch_operands = 0 : i64, tpu.core_type = #tpu.core_type<tc>} {
    %c0 = arith.constant 0 : index
    %c0_0 = arith.constant 0 : index
    %0 = vector.load %arg0[%c0, %c0_0] : memref<32x128xbf16, #tpu.memory_space<vmem>>, vector<32x128xbf16>
    %c0_1 = arith.constant 0 : index
    %c0_2 = arith.constant 0 : index
    %1 = vector.load %arg1[%c0_1, %c0_2] : memref<128x64xbf16, #tpu.memory_space<vmem>>, vector<128x64xbf16>
    %cst = arith.constant dense<0.000000e+00> : vector<32x64xf32>
    %2 = tpu.matmul %0, %1, %cst {dimension_numbers = #tpu.dot_dimension_numbers<[1], [0], [0], [1], [0, 0, 1, 1], [], []>} : vector<32x128xbf16>, vector<128x64xbf16>, vector<32x64xf32> -> vector<32x64xf32>
    %c0_3 = arith.constant 0 : index
    %c0_4 = arith.constant 0 : index
    %3 = vector.load %arg2[%c0_3, %c0_4] : memref<1x64xf32, #tpu.memory_space<vmem>>, vector<1x64xf32>
    %4 = vector.broadcast %3 : vector<1x64xf32> to vector<32x64xf32>
    %5 = arith.addf %2, %4 : vector<32x64xf32>
    %cst_5 = arith.constant 0.000000e+00 : f32
    %6 = vector.broadcast %cst_5 : f32 to vector<32x64xf32>
    %7 = arith.maximumf %5, %6 : vector<32x64xf32>
    %8 = arith.truncf %7 : vector<32x64xf32> to vector<32x64xbf16>
    %c0_6 = arith.constant 0 : index
    %c0_7 = arith.constant 0 : index
    %9 = vector.load %arg3[%c0_6, %c0_7] : memref<64x32xbf16, #tpu.memory_space<vmem>>, vector<64x32xbf16>
    %cst_8 = arith.constant dense<0.000000e+00> : vector<32x32xf32>
    %10 = tpu.matmul %8, %9, %cst_8 {dimension_numbers = #tpu.dot_dimension_numbers<[1], [0], [0], [1], [0, 0, 1, 1], [], []>} : vector<32x64xbf16>, vector<64x32xbf16>, vector<32x32xf32> -> vector<32x32xf32>
    %c0_9 = arith.constant 0 : index
    %c0_10 = arith.constant 0 : index
    %11 = vector.load %arg4[%c0_9, %c0_10] : memref<1x32xf32, #tpu.memory_space<vmem>>, vector<1x32xf32>
    %12 = vector.broadcast %11 : vector<1x32xf32> to vector<32x32xf32>
    %13 = arith.addf %10, %12 : vector<32x32xf32>
    %cst_11 = arith.constant 0.000000e+00 : f32
    %14 = vector.broadcast %cst_11 : f32 to vector<32x32xf32>
    %15 = arith.maximumf %13, %14 : vector<32x32xf32>
    %16 = vector.extract_strided_slice %15 {offsets = [0, 0], sizes = [32, 16], strides = [1, 1]} : vector<32x32xf32> to vector<32x16xf32>
    %17 = vector.extract_strided_slice %15 {offsets = [0, 16], sizes = [32, 16], strides = [1, 1]} : vector<32x32xf32> to vector<32x16xf32>
    %18 = arith.truncf %16 : vector<32x16xf32> to vector<32x16xbf16>
    %c0_12 = arith.constant 0 : index
    %c0_13 = arith.constant 0 : index
    %19 = vector.load %arg5[%c0_12, %c0_13] : memref<16x32xbf16, #tpu.memory_space<vmem>>, vector<16x32xbf16>
    %cst_14 = arith.constant dense<0.000000e+00> : vector<32x32xf32>
    %20 = tpu.matmul %18, %19, %cst_14 {dimension_numbers = #tpu.dot_dimension_numbers<[1], [0], [0], [1], [0, 0, 1, 1], [], []>} : vector<32x16xbf16>, vector<16x32xbf16>, vector<32x32xf32> -> vector<32x32xf32>
    %21 = tpu.concatenate %17, %17 in 1 : vector<32x16xf32>, vector<32x16xf32> -> vector<32x32xf32>
    %22 = arith.mulf %20, %21 : vector<32x32xf32>
    %23 = tpu.concatenate %22, %15 in 1 : vector<32x32xf32>, vector<32x32xf32> -> vector<32x64xf32>
    %24 = arith.truncf %23 : vector<32x64xf32> to vector<32x64xbf16>
    %c0_15 = arith.constant 0 : index
    %c0_16 = arith.constant 0 : index
    %25 = vector.load %arg6[%c0_15, %c0_16] : memref<64x128xbf16, #tpu.memory_space<vmem>>, vector<64x128xbf16>
    %cst_17 = arith.constant dense<0.000000e+00> : vector<32x128xf32>
    %26 = tpu.matmul %24, %25, %cst_17 {dimension_numbers = #tpu.dot_dimension_numbers<[1], [0], [0], [1], [0, 0, 1, 1], [], []>} : vector<32x64xbf16>, vector<64x128xbf16>, vector<32x128xf32> -> vector<32x128xf32>
    %c0_18 = arith.constant 0 : index
    %c0_19 = arith.constant 0 : index
    %27 = vector.load %arg7[%c0_18, %c0_19] : memref<1x128xf32, #tpu.memory_space<vmem>>, vector<1x128xf32>
    %28 = vector.broadcast %27 : vector<1x128xf32> to vector<32x128xf32>
    %29 = arith.addf %26, %28 : vector<32x128xf32>
    %c0_20 = arith.constant 0 : index
    %c0_21 = arith.constant 0 : index
    %30 = vector.load %arg8[%c0_20, %c0_21] : memref<32x128xf32, #tpu.memory_space<vmem>>, vector<32x128xf32>
    tpu.vector_store %arg8[%c0_20, %c0_21], %29 {strides = array<i32>} : memref<32x128xf32, #tpu.memory_space<vmem>>, vector<32x128xf32>,
    return
  }
}

</mosaic_0001>

<bundles_post_ra>
// kernel: re_decoder_forward.1
= control target key start
LH: loop header
LB: loop body
LE: loop exit
PB: predicated region body
PF: predicated region fallthrough
CT: control target
= control target key end

     0   :  { %vm211_vm0 = vcmask 523264   ;;  %s616_s15 = smov 112   ;;  %vm281_vm1 = vcmask 130048   ;;  %vm373_vm2 = vcmask 261120   ;;  %s751_s1 = inlined_call_operand.vmem [shape: bf16[128,64], index: 1, kind: input, shape index: {}]   ;;  %s752_s0 = inlined_call_operand.vmem [shape: bf16[32,128], index: 0, kind: input, shape index: {}]   ;;  %s753_s3 = inlined_call_operand.vmem [shape: bf16[64,32], index: 3, kind: input, shape index: {}]   ;;  %s754_s2 = inlined_call_operand.vmem [shape: f32[1,64], index: 2, kind: input, shape index: {}]   ;;  %s755_s5 = inlined_call_operand.vmem [shape: bf16[16,32], index: 5, kind: input, shape index: {}]   ;;  %s756_s4 = inlined_call_operand.vmem [shape: f32[1,32], index: 4, kind: input, shape index: {}]   ;;  %s757_s6 = inlined_call_operand.vmem [shape: bf16[64,128], index: 6, kind: input, shape index: {}]   ;;  %s758_s7 = inlined_call_operand.vmem [shape: f32[1,128], index: 7, kind: input, shape index: {}]   ;;  %s759_s8 = inlined_call_operand.vmem [shape: f32[32,128], index: 8, kind: output, shape index: {}]  }
   0x1   :  { %v597_v0 = vld [vmem:[%s751_s1 + $0x38] sm:$0xff]   ;;  %v598_v1 = vld [vmem:[%s751_s1 + $0x30] sm:$0xff]   ;;  %v599_v2 = vld [vmem:[%s751_s1 + $0x28] sm:$0xff]  }
   0x2   :  { %535 = vmatprep.subr.bf16.mxu0 %v597_v0  ;;  %v600_v3 = vld [vmem:[%s751_s1 + $0x20] sm:$0xff]   ;;  %v601_v5 = vld [vmem:[%s751_s1 + $0x18] sm:$0xff]   ;;  %v602_v7 = vld [vmem:[%s751_s1 + $0x10] sm:$0xff]  }
   0x3   :  { %536 = vmatpush3.bf16.msra.mxu0 %v597_v0  ;;  %v605_v4 = vld [vmem:[%s752_s0] sm:$0xff]   ;;  %v607_v6 = vld [vmem:[%s753_s3 + $0x18] sm:$0xff]   ;;  %v603_v8 = vld [vmem:[%s751_s1 + $0x8] sm:$0xff]  }
   0x4   :  { %537 = vmatprep.subr.bf16.mxu0 %v598_v1  ;;  %551 = vmatprep.mubr.bf16.mxu0 %v605_v4  ;;  %v604_v9 = vld [vmem:[%s751_s1] sm:$0xff]   ;;  %v606_v10 = vld [vmem:[%s752_s0 + $0x8] sm:$0xff]   ;;  %v608_v11 = vld [vmem:[%s753_s3 + $0x10] sm:$0xff]  }
   0x5   :  { %555 = vmatprep.subr.bf16.mxu1 %v607_v6  ;;  %v609_v12 = vld [vmem:[%s753_s3 + $0x8] sm:$0xff]   ;;  %v610_v13 = vld [vmem:[%s753_s3] sm:$0xff]   ;;  %v612_v36 = vld [vmem:[%s757_s6 + $0x18] sm:$0xff]  }
   0x6   :  { %556 = vmatpush3.bf16.msra.mxu1 %v607_v6  ;;  %v482_v16 = vld [vmem:[%s754_s2] ss:$0 sm:$0xff]  ;;  %v613_v48 = vld [vmem:[%s757_s6 + $0x10] sm:$0xff]   ;;  %v614_v49 = vld [vmem:[%s757_s6 + $0x8] sm:$0xff]  }
   0x7   :  { %538 = vmatpush3.bf16.msra.mxu0 %v598_v1  ;;  %557 = vmatprep.subr.bf16.mxu1 %v608_v11  ;;  %v611_v29 = vld [vmem:[%s755_s5] sm:$0xff]  }
   0x8   :  { %539 = vmatprep.subr.bf16.mxu0 %v599_v2  ;;  %v493_v30 = vld [vmem:[%s756_s4] ss:$0 sm:$0xff]  ;;  %s617_s4 = smov 32  }
   0x9   :  { %v615_v50 = vld [vmem:[%s757_s6] sm:$0xff]  }
   0xa   :  { %558 = vmatpush3.bf16.msra.mxu1 %v608_v11 }
   0xb   :  { %540 = vmatpush3.bf16.msra.mxu0 %v599_v2  ;;  %559 = vmatprep.subr.bf16.mxu1 %v609_v12 }
   0xc   :  { %541 = vmatprep.subr.bf16.mxu0 %v600_v3 }
   0xe   :  { %560 = vmatpush3.bf16.msra.mxu1 %v609_v12 }
   0xf   :  { %542 = vmatpush3.bf16.msra.mxu0 %v600_v3  ;;  %561 = vmatprep.subr.bf16.mxu1 %v610_v13 }
  0x10   :  { %543 = vmatprep.subr.bf16.mxu0 %v601_v5 }
  0x12   :  { %562 = vmatpush3.bf16.msra.mxu1 %v610_v13 }
  0x13   :  { %544 = vmatpush3.bf16.msra.mxu0 %v601_v5  ;;  %567 = vmatprep.subr.bf16.mxu1 %v611_v29 }
  0x14   :  { %545 = vmatprep.subr.bf16.mxu0 %v602_v7 }
  0x17   :  { %546 = vmatpush3.bf16.msra.mxu0 %v602_v7 }
  0x18   :  { %547 = vmatprep.subr.bf16.mxu0 %v603_v8 }
  0x1b   :  { %548 = vmatpush3.bf16.msra.mxu0 %v603_v8 }
  0x1c   :  { %549 = vmatprep.subr.bf16.mxu0 %v604_v9 }
  0x1f   :  { %550 = vmatpush3.bf16.msra.mxu0 %v604_v9 }
  0x22   :  { %552 = vmatmul.mubr.bf16.vlgmr.msra.gmra.mxu0 %v606_v10 }
  0xe2   :  { %v553_v14 = vpop.f32.mrf.mxu0 }
  0xe3   :  { %v160_v20 = vadd.f32 %v553_v14, %v482_v16 }
  0xe4   :  { %v151_v15 = vpop.f32.mrf.mxu0 }
  0xe5   :  { %v152_v18 = vadd.f32 %v482_v16, %v151_v15  ;;  %v168_v26 = vmax.f32 %v160_v20, 0.0  ;;  %v503_v15 = vld [vmem:[%s758_s7] ss:$0 sm:$0xff] }
  0xe6   :  { %v554_v17 = vpop.f32.mrf.mxu0 }
  0xe7   :  { %v163_v19 = vadd.f32 %v554_v17, %v482_v16  ;;  %v166_v24 = vmax.f32 %v152_v18, 0.0 }
  0xe8   :  { %v154_v21 = vpop.f32.mrf.mxu0 }
  0xe9   :  { %v155_v22 = vadd.f32 %v482_v16, %v154_v21  ;;  %v169_v23 = vmax.f32 %v163_v19, 0.0 }
  0xeb   :  { %v167_v25 = vmax.f32 %v155_v22, 0.0  ;;  %v171_v28 = vpack.c.bf16 %v169_v23, %v168_v26 }
  0xed   :  { %v170_v27 = vpack.c.bf16 %v167_v25, %v166_v24 }
  0xef   :  { %563 = vmatprep.mubr.msk.bf16.mxu1 %vm211_vm0, %v170_v27 }
  0xf0   :  { %564 = vmatmul.mubr.msk.bf16.vlgmr.msra.gmra.mxu1 %vm211_vm0, %v171_v28 }
  0xf1   :  { %568 = vmatpush3.bf16.msra.mxu1 %v611_v29 }
  0xf2   :  { %573 = vmatprep.subr.bf16.mxu1 %v612_v36 }
 0x1b0   :  { %v565_v31 = vpop.f32.mrf.mxu1 }
 0x1b1   :  { %v261_v32 = vadd.f32 %v565_v31, %v493_v30 }
 0x1b2   :  { %v252_v33 = vpop.f32.mrf.mxu1 }
 0x1b3   :  { %v269_v34 = vmax.f32 %v261_v32, 0.0  ;;  %v253_v35 = vadd.f32 %v493_v30, %v252_v33 }
 0x1b4   :  { %v566_v37 = vpop.f32.mrf.mxu1 }
 0x1b5   :  { %v267_v38 = vmax.f32 %v253_v35, 0.0  ;;  %v264_v39 = vadd.f32 %v566_v37, %v493_v30  ;;  %345 = vrot.lane.b32.xlu1 %v269_v34, %s616_s15 }
 0x1b6   :  { %v255_v40 = vpop.f32.mrf.mxu1 }
 0x1b7   :  { %v270_v41 = vmax.f32 %v264_v39, 0.0  ;;  %v256_v42 = vadd.f32 %v493_v30, %v255_v40  ;;  %341 = vrot.lane.b32.xlu0 %v267_v38, %s616_s15 }
 0x1b9   :  { %v268_v43 = vmax.f32 %v256_v42, 0.0  ;;  %347 = vrot.lane.b32.xlu1 %v270_v41, %s616_s15  ;;  %v592_v44 = vpack.i.bf16 %v270_v41, %v269_v34  ;;  %v272_v46 = vpack.c.bf16 %v270_v41, %v269_v34 }
 0x1bb   :  { %343 = vrot.lane.b32.xlu0 %v268_v43, %s616_s15  ;;  %v271_v45 = vpack.c.bf16 %v268_v43, %v267_v38  ;;  %v587_v47 = vpack.i.bf16 %v268_v43, %v267_v38 }
 0x1bd   :  { %593 = vrot.lane.b32.xlu1 %v592_v44, %s617_s4  ;;  %569 = vmatprep.mubr.msk.bf16.mxu1 %vm281_vm1, %v271_v45 }
 0x1be   :  { %570 = vmatmul.mubr.msk.bf16.vlgmr.msra.gmra.mxu1 %vm281_vm1, %v272_v46 }
 0x1bf   :  { %588 = vrot.lane.b32.xlu0 %v587_v47, %s617_s4  ;;  %574 = vmatpush3.bf16.msra.mxu1 %v612_v36 }
 0x1c0   :  { %575 = vmatprep.subr.bf16.mxu1 %v613_v48 }
 0x1c3   :  { %576 = vmatpush3.bf16.msra.mxu1 %v613_v48 }
 0x1c4   :  { %577 = vmatprep.subr.bf16.mxu1 %v614_v49 }
 0x1c7   :  { %578 = vmatpush3.bf16.msra.mxu1 %v614_v49 }
 0x1c8   :  { %579 = vmatprep.subr.bf16.mxu1 %v615_v50 }
 0x1cb   :  { %580 = vmatpush3.bf16.msra.mxu1 %v615_v50 }
 0x227   :  { %v346_v51 = vpop.permute.xlu1 %345 }
 0x228   :  { %v355_v62 = vsel %vm281_vm1, %v346_v51, %v269_v34 }
 0x229   :  { %v342_v52 = vpop.permute.xlu0 %341 }
 0x22a   :  { %v353_v59 = vsel %vm281_vm1, %v342_v52, %v267_v38 }
 0x22b   :  { %v348_v53 = vpop.permute.xlu1 %347 }
 0x22c   :  { %v356_v61 = vsel %vm281_vm1, %v348_v53, %v270_v41 }
 0x22d   :  { %v344_v54 = vpop.permute.xlu0 %343 }
 0x22e   :  { %v354_v4 = vsel %vm281_vm1, %v344_v54, %v268_v43 }
 0x22f   :  { %v594_v57 = vpop.permute.xlu1 %593 }
 0x230   :  { %v596_v1 = vunpack.i.h.bf16 %v594_v57  ;;  %v595_v8 = vunpack.i.l.bf16 %v594_v57 }
 0x231   :  { %v589_v58 = vpop.permute.xlu0 %588 }
 0x232   :  { %v591_v5 = vunpack.i.h.bf16 %v589_v58  ;;  %v590_v6 = vunpack.i.l.bf16 %v589_v58 }
 0x27e   :  { %v571_v55 = vpop.f32.mrf.mxu1 }
 0x27f   :  { %v359_v2 = vmul.f32 %v571_v55, %v355_v62 }
 0x280   :  { %v322_v56 = vpop.f32.mrf.mxu1 }
 0x281   :  { %v357_v63 = vmul.f32 %v353_v59, %v322_v56  ;;  %v376_v12 = vsel %vm373_vm2, %v359_v2, %v595_v8 }
 0x282   :  { %v572_v60 = vpop.f32.mrf.mxu1 }
 0x283   :  { %v360_v0 = vmul.f32 %v572_v60, %v356_v61  ;;  %v374_v10 = vsel %vm373_vm2, %v357_v63, %v590_v6 }
 0x284   :  { %v325_v3 = vpop.f32.mrf.mxu1 }
 0x285   :  { %v358_v7 = vmul.f32 %v354_v4, %v325_v3  ;;  %v377_v9 = vsel %vm373_vm2, %v360_v0, %v596_v1 }
 0x286   :  { %v379_v14 = vpack.c.bf16 %v377_v9, %v376_v12 }
 0x287   :  { %v375_v11 = vsel %vm373_vm2, %v358_v7, %v591_v5 }
 0x288   :  { %v378_v13 = vpack.c.bf16 %v375_v11, %v374_v10 }
 0x28a   :  { %581 = vmatprep.mubr.msk.bf16.mxu1 %vm211_vm0, %v378_v13 }
 0x28b   :  { %582 = vmatmul.mubr.msk.bf16.vlgmr.msra.gmra.mxu1 %vm211_vm0, %v379_v14 }
 0x34b   :  { %v583_v16 = vpop.f32.mrf.mxu1 }
 0x34c   :  { %v468_v17 = vadd.f32 %v583_v16, %v503_v15 }
 0x34d   :  { %v459_v18 = vpop.f32.mrf.mxu1 }
 0x34e   :  { %476 = vst [vmem:[%s759_s8 + $0x10] sm:$0xff] %v468_v17  ;;  %v460_v19 = vadd.f32 %v503_v15, %v459_v18 }
 0x34f   :  { %v584_v20 = vpop.f32.mrf.mxu1 }
 0x350   :  { %474 = vst [vmem:[%s759_s8] sm:$0xff] %v460_v19  ;;  %v471_v21 = vadd.f32 %v584_v20, %v503_v15 }
 0x351   :  { %v462_v22 = vpop.f32.mrf.mxu1 }
 0x352   :  { %477 = vst [vmem:[%s759_s8 + $0x18] sm:$0xff] %v471_v21  ;;  %v463_v23 = vadd.f32 %v503_v15, %v462_v22 }
 0x354   :  { %475 = vst [vmem:[%s759_s8 + $0x8] sm:$0xff] %v463_v23 }

</bundles_post_ra>
